<compile_context>
chip_gen: v7x
topology: tpu7x:2x2x1
jax: 0.10.0
libtpu: 0.0.40
codegen_flags: <defaults>
</compile_context>

<pallas_src>
import math

import jax
import jax.numpy as jnp
from jax import lax
from jax.experimental import pallas as pl
from jax.experimental.pallas import tpu as pltpu


def _attn_kernel(q_ref, k_ref, v0_ref, v1_ref, mask_ref, o_ref):
    """One grid step processes `bb` batches.

    Block shapes:
      q    (bb, Sq, D)
      k    (bb, Sk, D)    -- not pre-transposed; dot_general contracts D
      v0   (bb, Sk, Dv)
      v1   (bb, Dv, Do)
      mask (1,  Sq, Sk)   -- shared across batch
      o    (bb, Sq, Do)
    """
    mask = mask_ref[0]                          # (Sq, Sk)
    bb = q_ref.shape[0]
    scale = 1.0 / math.sqrt(q_ref.shape[-1])

    for b in range(bb):                         # bb small & static -> unrolled
        q = q_ref[b]                            # (Sq, D)
        k = k_ref[b]                            # (Sk, D)

        # Fold v1 into v0 inside the kernel:
        #   (softmax(qk) @ v0) @ v1 == softmax(qk) @ (v0 @ v1)
        # One tiny extra MXU matmul per batch; removes a wrapper einsum and
        # the HBM write+read of the folded weight.
        w = jnp.dot(v0_ref[b], v1_ref[b],
                    preferred_element_type=jnp.float32)          # (Sk, Do)

        # scores = q @ k^T / sqrt(d) + mask.  Contract the D axis of both
        # operands directly (no wrapper transpose, no in-kernel relayout).
        s = lax.dot_general(
            q, k, (((1,), (1,)), ((), ())),
            preferred_element_type=jnp.float32,
        ) * scale + mask                                          # (Sq, Sk)

        # Numerically stable softmax; normalization deferred past the PV
        # matmul and applied to the small (Sq, Do) output.
        s_max = jnp.max(s, axis=-1, keepdims=True)
        p = jnp.exp(s - s_max)                                    # (Sq, Sk)
        l = jnp.sum(p, axis=-1, keepdims=True)                    # (Sq, 1)

        o = jnp.dot(p, w, preferred_element_type=jnp.float32)     # (Sq, Do)
        # Exact normalization (plenty of VPU/EUP slack); the approximate
        # reciprocal previously used exceeded the numerical tolerance.
        o_ref[b] = (o / l).astype(o_ref.dtype)


_MAX_UNROLL = 8  # cap on batches per grid step (bounds vreg pressure / code size)


def _grid_plan(B: int):
    """Pick (batches_per_step, num_steps).

    v7x has 2 TensorCores/chip: keep >= 2 parallel grid steps so each TC gets
    work.  v5e/v6e have 1 TC: collapse to as few steps as possible to avoid
    the ~0.35us per-step pipeline overhead on this overhead-bound kernel.
    The device probe is a perf-only heuristic; any split is correct.
    """
    try:
        kind = jax.devices()[0].device_kind.lower()
    except Exception:
        kind = ""
    multi_tc = ("v7" in kind) or ("7x" in kind)

    cap = _MAX_UNROLL
    if multi_tc and B >= 2:
        cap = min(cap, B // 2)      # ensure at least 2 steps for the 2 TCs
    cap = max(cap, 1)

    bb = 1
    for d in range(1, cap + 1):     # largest divisor of B that is <= cap
        if B % d == 0:
            bb = d
    # TODO(synk): on v7x with B == 1, Sq=56 cannot be split into legal
    # (8,128)-aligned sub-blocks, so the second TensorCore stays idle.
    return bb, B // bb


def model_forward(q0, k0, v0, v1, mask):
    B, Sq, D = q0.shape
    _, Sk, _ = k0.shape
    Dv = v0.shape[-1]
    Do = v1.shape[-1]

    mask = jnp.broadcast_to(mask, (1, Sq, Sk)).astype(jnp.float32)

    bb, steps = _grid_plan(B)

    flops = 2 * B * (Sq * Sk * D + Sk * Dv * Do + Sq * Sk * Do)
    bytes_accessed = 4 * (q0.size + k0.size + v0.size + v1.size
                          + mask.size + B * Sq * Do)

    return pl.pallas_call(
        _attn_kernel,
        out_shape=jax.ShapeDtypeStruct((B, Sq, Do), q0.dtype),
        grid_spec=pltpu.PrefetchScalarGridSpec(
            num_scalar_prefetch=0,
            grid=(steps,),
            in_specs=[
                pl.BlockSpec((bb, Sq, D), lambda g: (g, 0, 0)),
                pl.BlockSpec((bb, Sk, D), lambda g: (g, 0, 0)),
                pl.BlockSpec((bb, Sk, Dv), lambda g: (g, 0, 0)),
                pl.BlockSpec((bb, Dv, Do), lambda g: (g, 0, 0)),
                pl.BlockSpec((1, Sq, Sk), lambda g: (0, 0, 0)),   # mask bcast
            ],
            out_specs=pl.BlockSpec((bb, Sq, Do), lambda g: (g, 0, 0)),
        ),
        compiler_params=pltpu.CompilerParams(
            dimension_semantics=("parallel",),
        ),
        cost_estimate=pl.CostEstimate(
            flops=flops,
            transcendentals=B * Sq * Sk,        # exp per score element
            bytes_accessed=bytes_accessed,
        ),
    )(q0, k0, v0, v1, mask)


def _reference(q0, k0, v0, v1, mask):
    qk = jnp.einsum("bqd,bkd->bqk", q0, k0) / math.sqrt(q0.shape[-1])
    qk = qk + mask
    attn = jax.nn.softmax(qk, axis=-1)
    out = jnp.einsum("bqk,bkv->bqv", attn, v0)
    out = jnp.einsum("bqv,bvo->bqo", out, v1)
    return out


if __name__ == "__main__":
    # Small shapes consistent with the module's (1, 56, 128) mask.
    B, Sq, Sk, D, Dv, Do = 2, 56, 128, 32, 32, 32

    key = jax.random.PRNGKey(0)
    kq, kk, kv0, kv1, km = jax.random.split(key, 5)

    q0 = jax.random.normal(kq, (B, Sq, D), dtype=jnp.float32)
    k0 = jax.random.normal(kk, (B, Sk, D), dtype=jnp.float32)
    v0 = jax.random.normal(kv0, (B, Sk, Dv), dtype=jnp.float32)
    v1 = jax.random.normal(kv1, (B, Dv, Do), dtype=jnp.float32)
    # Additive attention mask: -1e9 where rand > 0.7, else 0.
    # (The original script's bool.fill_(-1e9) degenerates to a constant mask;
    #  a sparse additive mask keeps the softmax semantics exercised.)
    mask = jnp.where(
        jax.random.uniform(km, (1, Sq, Sk)) > 0.7, -1e9, 0.0
    ).astype(jnp.float32)

    out = model_forward(q0, k0, v0, v1, mask)
    jax.block_until_ready(out)

    ref = _reference(q0, k0, v0, v1, mask)
    assert out.shape == (B, Sq, Do)
    assert jnp.allclose(out, ref, atol=2e-3, rtol=2e-3)

    print("KERNEL_OK")
</pallas_src>

<mosaic_0001>
module attributes {stable_mosaic.version = 11 : i64} {
  func.func @_attn_kernel(%arg0: i32, %arg1: memref<2x56x32xf32, #tpu.memory_space<vmem>>, %arg2: memref<2x128x32xf32, #tpu.memory_space<vmem>>, %arg3: memref<2x128x32xf32, #tpu.memory_space<vmem>>, %arg4: memref<2x32x32xf32, #tpu.memory_space<vmem>>, %arg5: memref<1x56x128xf32, #tpu.memory_space<vmem>>, %arg6: memref<2x56x32xf32, #tpu.memory_space<vmem>>) attributes {dimension_semantics = [#tpu.dimension_semantics<parallel>], iteration_bounds = array<i64: 1>, scalar_prefetch = 0 : i64, scratch_operands = 0 : i64, tpu.core_type = #tpu.core_type<tc>, window_params = [{transform_indices = @transform_0, window_bounds = array<i64: 2, 56, 32>}, {transform_indices = @transform_1, window_bounds = array<i64: 2, 128, 32>}, {transform_indices = @transform_2, window_bounds = array<i64: 2, 128, 32>}, {transform_indices = @transform_3, window_bounds = array<i64: 2, 32, 32>}, {pipeline_mode = #tpu.pipeline_mode<synchronous>, transform_indices = @transform_4, window_bounds = array<i64: 1, 56, 128>}, {transform_indices = @transform_5, window_bounds = array<i64: 2, 56, 32>}]} {
    %c0 = arith.constant 0 : index
    %c0_0 = arith.constant 0 : index
    %c0_1 = arith.constant 0 : index
    %0 = vector.load %arg5[%c0, %c0_0, %c0_1] : memref<1x56x128xf32, #tpu.memory_space<vmem>>, vector<1x56x128xf32>
    %1 = vector.shape_cast %0 : vector<1x56x128xf32> to vector<56x128xf32>
    %c0_2 = arith.constant 0 : index
    %c0_3 = arith.constant 0 : index
    %c0_4 = arith.constant 0 : index
    %2 = vector.load %arg1[%c0_2, %c0_3, %c0_4] : memref<2x56x32xf32, #tpu.memory_space<vmem>>, vector<1x56x32xf32>
    %3 = vector.shape_cast %2 : vector<1x56x32xf32> to vector<56x32xf32>
    %c0_5 = arith.constant 0 : index
    %c0_6 = arith.constant 0 : index
    %c0_7 = arith.constant 0 : index
    %4 = vector.load %arg2[%c0_5, %c0_6, %c0_7] : memref<2x128x32xf32, #tpu.memory_space<vmem>>, vector<1x128x32xf32>
    %5 = vector.shape_cast %4 : vector<1x128x32xf32> to vector<128x32xf32>
    %c0_8 = arith.constant 0 : index
    %c0_9 = arith.constant 0 : index
    %c0_10 = arith.constant 0 : index
    %6 = vector.load %arg3[%c0_8, %c0_9, %c0_10] : memref<2x128x32xf32, #tpu.memory_space<vmem>>, vector<1x128x32xf32>
    %7 = vector.shape_cast %6 : vector<1x128x32xf32> to vector<128x32xf32>
    %c0_11 = arith.constant 0 : index
    %c0_12 = arith.constant 0 : index
    %c0_13 = arith.constant 0 : index
    %8 = vector.load %arg4[%c0_11, %c0_12, %c0_13] : memref<2x32x32xf32, #tpu.memory_space<vmem>>, vector<1x32x32xf32>
    %9 = vector.shape_cast %8 : vector<1x32x32xf32> to vector<32x32xf32>
    %cst = arith.constant dense<0.000000e+00> : vector<128x32xf32>
    %10 = tpu.matmul %7, %9, %cst {dimension_numbers = #tpu.dot_dimension_numbers<[1], [0], [0], [1], [0, 0, 1, 1], [], []>} : vector<128x32xf32>, vector<32x32xf32>, vector<128x32xf32> -> vector<128x32xf32>
    %cst_14 = arith.constant dense<0.000000e+00> : vector<56x128xf32>
    %11 = tpu.matmul %3, %5, %cst_14 {dimension_numbers = #tpu.dot_dimension_numbers<[1], [1], [0], [0], [0, 0, 1, 0], [], []>} : vector<56x32xf32>, vector<128x32xf32>, vector<56x128xf32> -> vector<56x128xf32>
    %cst_15 = arith.constant 0.176776692 : f32
    %12 = vector.broadcast %cst_15 : f32 to vector<56x128xf32>
    %13 = arith.mulf %11, %12 : vector<56x128xf32>
    %14 = arith.addf %13, %1 : vector<56x128xf32>
    %cst_16 = arith.constant dense<0xFF800000> : vector<56xf32>
    %15 = vector.multi_reduction <maximumf>, %14, %cst_16 [1] : vector<56x128xf32> to vector<56xf32>
    %16 = vector.shape_cast %15 : vector<56xf32> to vector<56x1xf32>
    %17 = vector.broadcast %16 : vector<56x1xf32> to vector<56x128xf32>
    %18 = arith.subf %14, %17 : vector<56x128xf32>
    %19 = math.exp %18 : vector<56x128xf32>
    %cst_17 = arith.constant dense<0.000000e+00> : vector<56xf32>
    %20 = vector.multi_reduction <add>, %19, %cst_17 [1] : vector<56x128xf32> to vector<56xf32>
    %21 = vector.shape_cast %20 : vector<56xf32> to vector<56x1xf32>
    %cst_18 = arith.constant dense<0.000000e+00> : vector<56x32xf32>
    %22 = tpu.matmul %19, %10, %cst_18 {dimension_numbers = #tpu.dot_dimension_numbers<[1], [0], [0], [1], [0, 0, 1, 1], [], []>} : vector<56x128xf32>, vector<128x32xf32>, vector<56x32xf32> -> vector<56x32xf32>
    %23 = vector.broadcast %21 : vector<56x1xf32> to vector<56x32xf32>
    %24 = arith.divf %22, %23 : vector<56x32xf32>
    %c0_19 = arith.constant 0 : index
    %c0_20 = arith.constant 0 : index
    %c0_21 = arith.constant 0 : index
    %25 = vector.load %arg6[%c0_19, %c0_20, %c0_21] : memref<2x56x32xf32, #tpu.memory_space<vmem>>, vector<1x56x32xf32>
    %26 = vector.shape_cast %25 : vector<1x56x32xf32> to vector<56x32xf32>
    %27 = vector.shape_cast %24 : vector<56x32xf32> to vector<1x56x32xf32>
    tpu.vector_store %arg6[%c0_19, %c0_20, %c0_21], %27 {strides = array<i32>} : memref<2x56x32xf32, #tpu.memory_space<vmem>>, vector<1x56x32xf32>,
    %c1 = arith.constant 1 : index
    %c0_22 = arith.constant 0 : index
    %c0_23 = arith.constant 0 : index
    %28 = vector.load %arg1[%c1, %c0_22, %c0_23] : memref<2x56x32xf32, #tpu.memory_space<vmem>>, vector<1x56x32xf32>
    %29 = vector.shape_cast %28 : vector<1x56x32xf32> to vector<56x32xf32>
    %c1_24 = arith.constant 1 : index
    %c0_25 = arith.constant 0 : index
    %c0_26 = arith.constant 0 : index
    %30 = vector.load %arg2[%c1_24, %c0_25, %c0_26] : memref<2x128x32xf32, #tpu.memory_space<vmem>>, vector<1x128x32xf32>
    %31 = vector.shape_cast %30 : vector<1x128x32xf32> to vector<128x32xf32>
    %c1_27 = arith.constant 1 : index
    %c0_28 = arith.constant 0 : index
    %c0_29 = arith.constant 0 : index
    %32 = vector.load %arg3[%c1_27, %c0_28, %c0_29] : memref<2x128x32xf32, #tpu.memory_space<vmem>>, vector<1x128x32xf32>
    %33 = vector.shape_cast %32 : vector<1x128x32xf32> to vector<128x32xf32>
    %c1_30 = arith.constant 1 : index
    %c0_31 = arith.constant 0 : index
    %c0_32 = arith.constant 0 : index
    %34 = vector.load %arg4[%c1_30, %c0_31, %c0_32] : memref<2x32x32xf32, #tpu.memory_space<vmem>>, vector<1x32x32xf32>
    %35 = vector.shape_cast %34 : vector<1x32x32xf32> to vector<32x32xf32>
    %cst_33 = arith.constant dense<0.000000e+00> : vector<128x32xf32>
    %36 = tpu.matmul %33, %35, %cst_33 {dimension_numbers = #tpu.dot_dimension_numbers<[1], [0], [0], [1], [0, 0, 1, 1], [], []>} : vector<128x32xf32>, vector<32x32xf32>, vector<128x32xf32> -> vector<128x32xf32>
    %cst_34 = arith.constant dense<0.000000e+00> : vector<56x128xf32>
    %37 = tpu.matmul %29, %31, %cst_34 {dimension_numbers = #tpu.dot_dimension_numbers<[1], [1], [0], [0], [0, 0, 1, 0], [], []>} : vector<56x32xf32>, vector<128x32xf32>, vector<56x128xf32> -> vector<56x128xf32>
    %cst_35 = arith.constant 0.176776692 : f32
    %38 = vector.broadcast %cst_35 : f32 to vector<56x128xf32>
    %39 = arith.mulf %37, %38 : vector<56x128xf32>
    %40 = arith.addf %39, %1 : vector<56x128xf32>
    %cst_36 = arith.constant dense<0xFF800000> : vector<56xf32>
    %41 = vector.multi_reduction <maximumf>, %40, %cst_36 [1] : vector<56x128xf32> to vector<56xf32>
    %42 = vector.shape_cast %41 : vector<56xf32> to vector<56x1xf32>
    %43 = vector.broadcast %42 : vector<56x1xf32> to vector<56x128xf32>
    %44 = arith.subf %40, %43 : vector<56x128xf32>
    %45 = math.exp %44 : vector<56x128xf32>
    %cst_37 = arith.constant dense<0.000000e+00> : vector<56xf32>
    %46 = vector.multi_reduction <add>, %45, %cst_37 [1] : vector<56x128xf32> to vector<56xf32>
    %47 = vector.shape_cast %46 : vector<56xf32> to vector<56x1xf32>
    %cst_38 = arith.constant dense<0.000000e+00> : vector<56x32xf32>
    %48 = tpu.matmul %45, %36, %cst_38 {dimension_numbers = #tpu.dot_dimension_numbers<[1], [0], [0], [1], [0, 0, 1, 1], [], []>} : vector<56x128xf32>, vector<128x32xf32>, vector<56x32xf32> -> vector<56x32xf32>
    %49 = vector.broadcast %47 : vector<56x1xf32> to vector<56x32xf32>
    %50 = arith.divf %48, %49 : vector<56x32xf32>
    %c1_39 = arith.constant 1 : index
    %c0_40 = arith.constant 0 : index
    %c0_41 = arith.constant 0 : index
    %51 = vector.load %arg6[%c1_39, %c0_40, %c0_41] : memref<2x56x32xf32, #tpu.memory_space<vmem>>, vector<1x56x32xf32>
    %52 = vector.shape_cast %51 : vector<1x56x32xf32> to vector<56x32xf32>
    %53 = vector.shape_cast %50 : vector<56x32xf32> to vector<1x56x32xf32>
    tpu.vector_store %arg6[%c1_39, %c0_40, %c0_41], %53 {strides = array<i32>} : memref<2x56x32xf32, #tpu.memory_space<vmem>>, vector<1x56x32xf32>,
    return
  }
  func.func @transform_0(%arg0: i32) -> (i32, i32, i32) {
    %c0_i32 = arith.constant 0 : i32
    %c0_i32_0 = arith.constant 0 : i32
    %c0_i32_1 = arith.constant 0 : i32
    return %arg0, %c0_i32, %c0_i32_0 : i32, i32, i32
  }
  func.func @transform_1(%arg0: i32) -> (i32, i32, i32) {
    %c0_i32 = arith.constant 0 : i32
    %c0_i32_0 = arith.constant 0 : i32
    %c0_i32_1 = arith.constant 0 : i32
    return %arg0, %c0_i32, %c0_i32_0 : i32, i32, i32
  }
  func.func @transform_2(%arg0: i32) -> (i32, i32, i32) {
    %c0_i32 = arith.constant 0 : i32
    %c0_i32_0 = arith.constant 0 : i32
    %c0_i32_1 = arith.constant 0 : i32
    return %arg0, %c0_i32, %c0_i32_0 : i32, i32, i32
  }
  func.func @transform_3(%arg0: i32) -> (i32, i32, i32) {
    %c0_i32 = arith.constant 0 : i32
    %c0_i32_0 = arith.constant 0 : i32
    %c0_i32_1 = arith.constant 0 : i32
    return %arg0, %c0_i32, %c0_i32_0 : i32, i32, i32
  }
  func.func @transform_4(%arg0: i32) -> (i32, i32, i32) {
    %c0_i32 = arith.constant 0 : i32
    %c0_i32_0 = arith.constant 0 : i32
    %c0_i32_1 = arith.constant 0 : i32
    %c0_i32_2 = arith.constant 0 : i32
    return %c0_i32, %c0_i32_0, %c0_i32_1 : i32, i32, i32
  }
  func.func @transform_5(%arg0: i32) -> (i32, i32, i32) {
    %c0_i32 = arith.constant 0 : i32
    %c0_i32_0 = arith.constant 0 : i32
    %c0_i32_1 = arith.constant 0 : i32
    return %arg0, %c0_i32, %c0_i32_0 : i32, i32, i32
  }
}

</mosaic_0001>

<bundles_post_ra>
// kernel: tpu_custom_call.1
= control target key start
LH: loop header
LB: loop body
LE: loop exit
PB: predicated region body
PF: predicated region fallthrough
CT: control target
= control target key end

     0   :  { %vm70_vm0 = vcmask 261120   ;;  %v1938_v0 = vmov 0.0|0.0   ;;  %vm1939_vm2 = vmmov 0   ;;  %v1940_v4 = vmov 0.0   ;;  %s2562_s1 = inlined_call_operand.vmem [shape: f32[2,128,32], index: 1, kind: input, shape index: {}]   ;;  %s2563_s3 = inlined_call_operand.vmem [shape: f32[2,32,32], index: 3, kind: input, shape index: {}]   ;;  %s2564_s2 = inlined_call_operand.vmem [shape: f32[2,128,32], index: 2, kind: input, shape index: {}]   ;;  %s2565_s0 = inlined_call_operand.vmem [shape: f32[2,56,32], index: 0, kind: input, shape index: {}]   ;;  %s2566_s4 = inlined_call_operand.vmem [shape: f32[1,56,128], index: 4, kind: input, shape index: {}]   ;;  %s2567_s5 = inlined_call_operand.vmem [shape: f32[2,56,32], index: 5, kind: output, shape index: {}]  }
   0x1   :  { %1759 = vmatprep.subr.bf16.mxu1 %v1938_v0  ;;  %v34_v1 = vld [vmem:[%s2562_s1] sm:$0xff]  ;;  %v35_v2 = vld [vmem:[%s2562_s1 + $0x8] sm:$0xff]  ;;  %vm1980_vm1 = vmpackc.low %vm70_vm0, %vm70_vm0  ;;  %1539 = vmatprep.mubr.msk.f32.mxu1 %vm1939_vm2, %v1940_v4 }
   0x2   :  { %v1760_v5 = vpack.c.bf16 %v35_v2, %v34_v1  ;;  %v36_v6 = vld [vmem:[%s2562_s1 + $0x10] sm:$0xff]  ;;  %v37_v7 = vld [vmem:[%s2562_s1 + $0x18] sm:$0xff]  ;;  %v38_v9 = vld [vmem:[%s2562_s1 + $0x20] sm:$0xff] }
   0x3   :  { %v1764_v8 = vpack.c.bf16 %v37_v7, %v36_v6  ;;  %v39_v10 = vld [vmem:[%s2562_s1 + $0x28] sm:$0xff]  ;;  %v66_v11 = vld [vmem:[%s2563_s3] sm:$0xff]  ;;  %v68_v14 = vld [vmem:[%s2563_s3 + $0x10] sm:$0xff] }
   0x4   :  { %1762 = vmatpush3.bf16.xpose.msk.msra.mxu1 %vm1980_vm1, %v1760_v5  ;;  %v67_v12 = vld [vmem:[%s2563_s3 + $0x8] sm:$0xff]  ;;  %v69_v15 = vld [vmem:[%s2563_s3 + $0x18] sm:$0xff]  ;;  %v50_v17 = vld [vmem:[%s2564_s2] sm:$0xff]  ;;  %v1768_v18 = vpack.c.bf16 %v39_v10, %v38_v9 }
   0x5   :  { %1763 = vmatprep.subr.bf16.mxu1 %v1938_v0  ;;  %v1751_v13 = vpack.c.bf16 %v67_v12, %v66_v11  ;;  %v1755_v16 = vpack.c.bf16 %v69_v15, %v68_v14  ;;  %1483 = vmatprep.mubr.msk.f32.mxu0 %vm70_vm0, %v50_v17  ;;  %v40_v19 = vld [vmem:[%s2562_s1 + $0x30] sm:$0xff]  ;;  %v41_v20 = vld [vmem:[%s2562_s1 + $0x38] sm:$0xff]  ;;  %v51_v21 = vld [vmem:[%s2564_s2 + $0x8] sm:$0xff] }
   0x6   :  { %v52_v22 = vld [vmem:[%s2564_s2 + $0x10] sm:$0xff]  ;;  %v1772_v23 = vpack.c.bf16 %v41_v20, %v40_v19  ;;  %v53_v24 = vld [vmem:[%s2564_s2 + $0x18] sm:$0xff]  ;;  %v54_v25 = vld [vmem:[%s2564_s2 + $0x20] sm:$0xff] }
   0x7   :  { %1752 = vmatprep.subr.bf16.mxu0 %v1751_v13  ;;  %v42_v26 = vld [vmem:[%s2562_s1 + $0x40] sm:$0xff]  ;;  %v43_v27 = vld [vmem:[%s2562_s1 + $0x48] sm:$0xff]  ;;  %v56_v29 = vld [vmem:[%s2564_s2 + $0x30] sm:$0xff] }
   0x8   :  { %1754 = vmatpush3.bf16.msra.mxu0 %v1751_v13  ;;  %v55_v28 = vld [vmem:[%s2564_s2 + $0x28] sm:$0xff]  ;;  %v1776_v30 = vpack.c.bf16 %v43_v27, %v42_v26  ;;  %v57_v31 = vld [vmem:[%s2564_s2 + $0x38] sm:$0xff]  ;;  %v58_v32 = vld [vmem:[%s2564_s2 + $0x40] sm:$0xff] }
   0x9   :  { %1756 = vmatprep.subr.bf16.mxu0 %v1755_v16  ;;  %v44_v33 = vld [vmem:[%s2562_s1 + $0x50] sm:$0xff]  ;;  %v45_v34 = vld [vmem:[%s2562_s1 + $0x58] sm:$0xff]  ;;  %v59_v35 = vld [vmem:[%s2564_s2 + $0x48] sm:$0xff] }
   0xa   :  { %v60_v36 = vld [vmem:[%s2564_s2 + $0x50] sm:$0xff]  ;;  %v1780_v37 = vpack.c.bf16 %v45_v34, %v44_v33  ;;  %v61_v38 = vld [vmem:[%s2564_s2 + $0x58] sm:$0xff]  ;;  %v62_v39 = vld [vmem:[%s2564_s2 + $0x60] sm:$0xff] }
   0xb   :  { %v46_v40 = vld [vmem:[%s2562_s1 + $0x60] sm:$0xff]  ;;  %v47_v41 = vld [vmem:[%s2562_s1 + $0x68] sm:$0xff]  ;;  %v64_v43 = vld [vmem:[%s2564_s2 + $0x70] sm:$0xff] }
   0xc   :  { %1766 = vmatpush3.bf16.xpose.msk.msra.mxu1 %vm1980_vm1, %v1764_v8  ;;  %1758 = vmatpush3.bf16.msra.mxu0 %v1755_v16  ;;  %v63_v42 = vld [vmem:[%s2564_s2 + $0x68] sm:$0xff]  ;;  %v1784_v44 = vpack.c.bf16 %v47_v41, %v46_v40  ;;  %v65_v45 = vld [vmem:[%s2564_s2 + $0x78] sm:$0xff]  ;;  %v48_v46 = vld [vmem:[%s2562_s1 + $0x70] sm:$0xff] }
   0xd   :  { %1767 = vmatprep.subr.bf16.mxu1 %v1938_v0  ;;  %1791 = vmatprep.subr.bf16.mxu0 %v1938_v0  ;;  %v49_v47 = vld [vmem:[%s2562_s1 + $0x78] sm:$0xff]  ;;  %v1261_v49 = vld [vmem:[%s2562_s1 + $0x80] sm:$0xff]  ;;  %v1262_v50 = vld [vmem:[%s2562_s1 + $0x88] sm:$0xff] }
   0xe   :  { %v1788_v48 = vpack.c.bf16 %v49_v47, %v48_v46  ;;  %v27_v51 = vld [vmem:[%s2565_s0] sm:$0xff]  ;;  %v1824_v52 = vpack.c.bf16 %v1262_v50, %v1261_v49  ;;  %v28_v53 = vld [vmem:[%s2565_s0 + $0x8] sm:$0xff]  ;;  %v1263_v54 = vld [vmem:[%s2562_s1 + $0x90] sm:$0xff] }
   0xf   :  { %1484 = vmatmul.mubr.msk.f32.vlgmr.msra.gmra.mrb[0].mxu0 %vm70_vm0, %v51_v21  ;;  %v1264_v55 = vld [vmem:[%s2562_s1 + $0x98] sm:$0xff]  ;;  %v29_v56 = vld [vmem:[%s2565_s0 + $0x10] sm:$0xff]  ;;  %v1265_v59 = vld [vmem:[%s2562_s1 + $0xa0] sm:$0xff] }
  0x10   :  { %1486 = vmatprep.mubr.msk.f32.mxu0 %vm70_vm0, %v52_v22  ;;  %v1828_v57 = vpack.c.bf16 %v1264_v55, %v1263_v54  ;;  %v30_v58 = vld [vmem:[%s2565_s0 + $0x18] sm:$0xff]  ;;  %v1266_v60 = vld [vmem:[%s2562_s1 + $0xa8] sm:$0xff]  ;;  %v31_v61 = vld [vmem:[%s2565_s0 + $0x20] sm:$0xff] }
  0x11   :  { %v1832_v62 = vpack.c.bf16 %v1266_v60, %v1265_v59  ;;  %v32_v63 = vld [vmem:[%s2565_s0 + $0x28] sm:$0xff]  ;;  %v1267_v1 = vld [vmem:[%s2562_s1 + $0xb0] sm:$0xff]  ;;  %v1268_v2 = vld [vmem:[%s2562_s1 + $0xb8] sm:$0xff] }
  0x12   :  { %v33_v5 = vld [vmem:[%s2565_s0 + $0x30] sm:$0xff]  ;;  %v1836_v6 = vpack.c.bf16 %v1268_v2, %v1267_v1  ;;  %v1269_v7 = vld [vmem:[%s2562_s1 + $0xc0] sm:$0xff]  ;;  %v1270_v8 = vld [vmem:[%s2562_s1 + $0xc8] sm:$0xff] }
  0x13   :  { %1487 = vmatmul.mubr.msk.f32.gmra.mrb[2].mxu0 %vm70_vm0, %v53_v24  ;;  %v1840_v9 = vpack.c.bf16 %v1270_v8, %v1269_v7  ;;  %v1271_v10 = vld [vmem:[%s2562_s1 + $0xd0] sm:$0xff]  ;;  %v1272_v11 = vld [vmem:[%s2562_s1 + $0xd8] sm:$0xff]  ;;  %v1273_v13 = vld [vmem:[%s2562_s1 + $0xe0] sm:$0xff] }
  0x14   :  { %1770 = vmatpush3.bf16.xpose.msk.msra.mxu1 %vm1980_vm1, %v1768_v18  ;;  %1489 = vmatprep.mubr.msk.f32.mxu0 %vm70_vm0, %v54_v25  ;;  %v1844_v12 = vpack.c.bf16 %v1272_v11, %v1271_v10  ;;  %v1274_v14 = vld [vmem:[%s2562_s1 + $0xe8] sm:$0xff]  ;;  %v1275_v16 = vld [vmem:[%s2562_s1 + $0xf0] sm:$0xff]  ;;  %v1276_v17 = vld [vmem:[%s2562_s1 + $0xf8] sm:$0xff] }
  0x15   :  { %1771 = vmatprep.subr.bf16.mxu1 %v1938_v0  ;;  %v1848_v15 = vpack.c.bf16 %v1274_v14, %v1273_v13  ;;  %v1852_v18 = vpack.c.bf16 %v1276_v17, %v1275_v16  ;;  %v1254_v19 = vld [vmem:[%s2565_s0 + $0x38] sm:$0xff]  ;;  %v1255_v20 = vld [vmem:[%s2565_s0 + $0x40] sm:$0xff]  ;;  %v1256_v3 = vld [vmem:[%s2565_s0 + $0x48] sm:$0xff] }
  0x16   :  { %v1257_v21 = vld [vmem:[%s2565_s0 + $0x50] sm:$0xff]  ;;  %v1258_v22 = vld [vmem:[%s2565_s0 + $0x58] sm:$0xff]  ;;  %v1260_v24 = vld [vmem:[%s2565_s0 + $0x68] sm:$0xff] }
  0x17   :  { %1490 = vmatmul.mubr.msk.f32.gmra.mrb[4].mxu0 %vm70_vm0, %v55_v28  ;;  %v21_v47 = vld [vmem:[%s2566_s4 + $0x8] sm:$0xff] }
  0x18   :  { %1492 = vmatprep.mubr.msk.f32.mxu0 %vm70_vm0, %v56_v29  ;;  %v25_v7 = vld [vmem:[%s2566_s4 + $0x28] sm:$0xff] }
  0x1b   :  { %1493 = vmatmul.mubr.msk.f32.gmra.mrb[6].mxu0 %vm70_vm0, %v57_v31 }
  0x1c   :  { %1774 = vmatpush3.bf16.xpose.msk.msra.mxu1 %vm1980_vm1, %v1772_v23  ;;  %1495 = vmatprep.mubr.msk.f32.mxu0 %vm70_vm0, %v58_v32  ;;  %v1259_v23 = vld [vmem:[%s2565_s0 + $0x60] sm:$0xff] }
  0x1d   :  { %1775 = vmatprep.subr.bf16.mxu1 %v1938_v0 }
  0x1f   :  { %1496 = vmatmul.mubr.msk.f32.gmra.mrb[8].mxu0 %vm70_vm0, %v59_v35 }
  0x20   :  { %1498 = vmatprep.mubr.msk.f32.mxu0 %vm70_vm0, %v60_v36 }
  0x23   :  { %1499 = vmatmul.mubr.msk.f32.gmra.mrb[10].mxu0 %vm70_vm0, %v61_v38 }
  0x24   :  { %1778 = vmatpush3.bf16.xpose.msk.msra.mxu1 %vm1980_vm1, %v1776_v30  ;;  %1501 = vmatprep.mubr.msk.f32.mxu0 %vm70_vm0, %v62_v39 }
  0x25   :  { %1779 = vmatprep.subr.bf16.mxu1 %v1938_v0 }
  0x27   :  { %1502 = vmatmul.mubr.msk.f32.gmra.mrb[12].mxu0 %vm70_vm0, %v63_v42  ;;  %v20_v42 = vld [vmem:[%s2566_s4] sm:$0xff] }
  0x28   :  { %1504 = vmatprep.mubr.msk.f32.mxu0 %vm70_vm0, %v64_v43 }
  0x2b   :  { %1505 = vmatmul.mubr.msk.f32.gmra.mrb[14].mxu0 %vm70_vm0, %v65_v45 }
  0x2c   :  { %1782 = vmatpush3.bf16.xpose.msk.msra.mxu1 %vm1980_vm1, %v1780_v37  ;;  %1592 = vmatprep.mubr.msk.f32.mxu0 %vm1939_vm2, %v1940_v4 }
  0x2d   :  { %1783 = vmatprep.subr.bf16.mxu1 %v1938_v0 }
  0x34   :  { %1786 = vmatpush3.bf16.xpose.msk.msra.mxu1 %vm1980_vm1, %v1784_v44 }
  0x35   :  { %1787 = vmatprep.subr.bf16.mxu1 %v1938_v0 }
  0x3c   :  { %1790 = vmatpush3.bf16.xpose.msk.msra.mxu1 %vm1980_vm1, %v1788_v48 }
  0x3d   :  { %1823 = vmatprep.subr.bf16.mxu1 %v1938_v0 }
  0x43   :  { %1540 = vmatmul.mubr.msk.f32.vlgmr.msra.gmra.mrb[0].mxu1 %vm70_vm0, %v27_v51 }
  0x44   :  { %1542 = vmatprep.mubr.msk.f32.mxu1 %vm1939_vm2, %v1940_v4  ;;  %1826 = vmatpush3.bf16.xpose.msk.msra.mxu1 %vm1980_vm1, %v1824_v52  ;;  %v22_v52 = vld [vmem:[%s2566_s4 + $0x10] sm:$0xff] }
  0x45   :  { %1827 = vmatprep.subr.bf16.mxu1 %v1938_v0 }
  0x47   :  { %1543 = vmatmul.mubr.msk.f32.gmra.mrb[2].mxu1 %vm70_vm0, %v28_v53 }
  0x48   :  { %1545 = vmatprep.mubr.msk.f32.mxu1 %vm1939_vm2, %v1940_v4 }
  0x4b   :  { %1546 = vmatmul.mubr.msk.f32.gmra.mrb[4].mxu1 %vm70_vm0, %v29_v56 }
  0x4c   :  { %1548 = vmatprep.mubr.msk.f32.mxu1 %vm1939_vm2, %v1940_v4  ;;  %1830 = vmatpush3.bf16.xpose.msk.msra.mxu1 %vm1980_vm1, %v1828_v57  ;;  %v23_v57 = vld [vmem:[%s2566_s4 + $0x18] sm:$0xff] }
  0x4d   :  { %1831 = vmatprep.subr.bf16.mxu1 %v1938_v0 }
  0x4f   :  { %1549 = vmatmul.mubr.msk.f32.gmra.mrb[6].mxu1 %vm70_vm0, %v30_v58 }
  0x50   :  { %1551 = vmatprep.mubr.msk.f32.mxu1 %vm1939_vm2, %v1940_v4 }
  0x53   :  { %1552 = vmatmul.mubr.msk.f32.gmra.mrb[8].mxu1 %vm70_vm0, %v31_v61 }
  0x54   :  { %1554 = vmatprep.mubr.msk.f32.mxu1 %vm1939_vm2, %v1940_v4  ;;  %1834 = vmatpush3.bf16.xpose.msk.msra.mxu1 %vm1980_vm1, %v1832_v62  ;;  %v24_v62 = vld [vmem:[%s2566_s4 + $0x20] sm:$0xff] }
  0x55   :  { %1835 = vmatprep.subr.bf16.mxu1 %v1938_v0 }
  0x57   :  { %1555 = vmatmul.mubr.msk.f32.gmra.mrb[10].mxu1 %vm70_vm0, %v32_v63 }
  0x58   :  { %1557 = vmatprep.mubr.msk.f32.mxu1 %vm1939_vm2, %v1940_v4 }
  0x5b   :  { %1558 = vmatmul.mubr.msk.f32.gmra.mrb[12].mxu1 %vm70_vm0, %v33_v5 }
  0x5c   :  { %1838 = vmatpush3.bf16.xpose.msk.msra.mxu1 %vm1980_vm1, %v1836_v6  ;;  %1677 = vmatprep.mubr.msk.f32.mxu1 %vm1939_vm2, %v1940_v4 }
  0x5d   :  { %1839 = vmatprep.subr.bf16.mxu1 %v1938_v0 }
  0x64   :  { %1842 = vmatpush3.bf16.xpose.msk.msra.mxu1 %vm1980_vm1, %v1840_v9 }
  0x65   :  { %1843 = vmatprep.subr.bf16.mxu1 %v1938_v0 }
  0x6c   :  { %1846 = vmatpush3.bf16.xpose.msk.msra.mxu1 %vm1980_vm1, %v1844_v12 }
  0x6d   :  { %1847 = vmatprep.subr.bf16.mxu1 %v1938_v0 }
  0x74   :  { %1850 = vmatpush3.bf16.xpose.msk.msra.mxu1 %vm1980_vm1, %v1848_v15  ;;  %v26_v15 = vld [vmem:[%s2566_s4 + $0x30] sm:$0xff] }
  0x75   :  { %1851 = vmatprep.subr.bf16.mxu1 %v1938_v0 }
  0x7c   :  { %1854 = vmatpush3.bf16.xpose.msk.msra.mxu1 %vm1980_vm1, %v1852_v18 }
  0x83   :  { %1678 = vmatmul.mubr.msk.f32.vlgmr.msra.gmra.mrb[14].mxu1 %vm70_vm0, %v1254_v19 }
  0x84   :  { %1680 = vmatprep.mubr.msk.f32.mxu1 %vm1939_vm2, %v1940_v4 }
  0x87   :  { %1681 = vmatmul.mubr.msk.f32.gmra.mrb[16].mxu1 %vm70_vm0, %v1255_v20 }
  0x88   :  { %1683 = vmatprep.mubr.msk.f32.mxu1 %vm1939_vm2, %v1940_v4 }
  0x8b   :  { %1684 = vmatmul.mubr.msk.f32.gmra.mrb[18].mxu1 %vm70_vm0, %v1256_v3 }
  0x8c   :  { %1686 = vmatprep.mubr.msk.f32.mxu1 %vm1939_vm2, %v1940_v4 }
  0x8f   :  { %1687 = vmatmul.mubr.msk.f32.gmra.mrb[20].mxu1 %vm70_vm0, %v1257_v21 }
  0x90   :  { %1689 = vmatprep.mubr.msk.f32.mxu1 %vm1939_vm2, %v1940_v4 }
  0x93   :  { %1690 = vmatmul.mubr.msk.f32.gmra.mrb[22].mxu1 %vm70_vm0, %v1258_v22  ;;  %v1293_v22 = vld [vmem:[%s2563_s3 + $0x20] sm:$0xff] }
  0x94   :  { %1692 = vmatprep.mubr.msk.f32.mxu1 %vm1939_vm2, %v1940_v4 }
  0x97   :  { %1693 = vmatmul.mubr.msk.f32.gmra.mrb[24].mxu1 %vm70_vm0, %v1259_v23  ;;  %v1294_v23 = vld [vmem:[%s2563_s3 + $0x28] sm:$0xff] }
  0x98   :  { %1695 = vmatprep.mubr.msk.f32.mxu1 %vm1939_vm2, %v1940_v4 }
  0x9b   :  { %1696 = vmatmul.mubr.msk.f32.gmra.mrb[26].mxu1 %vm70_vm0, %v1260_v24  ;;  %v1815_v24 = vpack.c.bf16 %v1294_v23, %v1293_v22  ;;  %v1278_v23 = vld [vmem:[%s2564_s2 + $0x88] sm:$0xff] }
  0xe2   :  { %v1485_v25 = vpop.f32.mrb[0].mxu0 }
  0xe3   :  { %v185_v26 = vpop.f32.mrb[1].mxu0 }
  0xe4   :  { %v1792_v27 = vpack.c.bf16 %v1485_v25, %v185_v26 }
  0xe6   :  { %v1488_v28 = vpop.f32.mrb[2].mxu0  ;;  %1793 = vmatpush3.bf16.msra.mxu0 %v1792_v27 }
  0xe7   :  { %v195_v29 = vpop.f32.mrb[3].mxu0  ;;  %1794 = vmatprep.subr.bf16.mxu0 %v1938_v0 }
  0xe8   :  { %v1795_v30 = vpack.c.bf16 %v1488_v28, %v195_v29 }
  0xea   :  { %v1491_v31 = vpop.f32.mrb[4].mxu0  ;;  %1796 = vmatpush3.bf16.msra.mxu0 %v1795_v30 }
  0xeb   :  { %v205_v32 = vpop.f32.mrb[5].mxu0  ;;  %1797 = vmatprep.subr.bf16.mxu0 %v1938_v0 }
  0xec   :  { %v1798_v33 = vpack.c.bf16 %v1491_v31, %v205_v32 }
  0xee   :  { %v1494_v34 = vpop.f32.mrb[6].mxu0  ;;  %1799 = vmatpush3.bf16.msra.mxu0 %v1798_v33 }
  0xef   :  { %v215_v35 = vpop.f32.mrb[7].mxu0  ;;  %1800 = vmatprep.subr.bf16.mxu0 %v1938_v0 }
  0xf0   :  { %v1801_v36 = vpack.c.bf16 %v1494_v34, %v215_v35 }
  0xf2   :  { %v1497_v37 = vpop.f32.mrb[8].mxu0  ;;  %1802 = vmatpush3.bf16.msra.mxu0 %v1801_v36 }
  0xf3   :  { %v225_v38 = vpop.f32.mrb[9].mxu0  ;;  %1803 = vmatprep.subr.bf16.mxu0 %v1938_v0 }
  0xf4   :  { %v1804_v39 = vpack.c.bf16 %v1497_v37, %v225_v38 }
  0xf6   :  { %v1500_v40 = vpop.f32.mrb[10].mxu0  ;;  %1805 = vmatpush3.bf16.msra.mxu0 %v1804_v39 }
  0xf7   :  { %1806 = vmatprep.subr.bf16.mxu0 %v1938_v0  ;;  %v235_v5 = vpop.f32.mrb[11].mxu0 }
  0xf8   :  { %v1807_v8 = vpack.c.bf16 %v1500_v40, %v235_v5 }
  0xfa   :  { %v1503_v11 = vpop.f32.mrb[12].mxu0  ;;  %1808 = vmatpush3.bf16.msra.mxu0 %v1807_v8 }
  0xfb   :  { %v245_v13 = vpop.f32.mrb[13].mxu0  ;;  %1809 = vmatprep.subr.bf16.mxu0 %v1938_v0 }
  0xfc   :  { %v1810_v16 = vpack.c.bf16 %v1503_v11, %v245_v13 }
  0xfe   :  { %v1506_v19 = vpop.f32.mrb[14].mxu0  ;;  %1811 = vmatpush3.bf16.msra.mxu0 %v1810_v16 }
  0xff   :  { %v255_v3 = vpop.f32.mrb[15].mxu0  ;;  %1812 = vmatprep.subr.bf16.mxu0 %v1938_v0 }
 0x100   :  { %v1813_v21 = vpack.c.bf16 %v1506_v19, %v255_v3 }
 0x102   :  { %1814 = vmatpush3.bf16.msra.mxu0 %v1813_v21 }
 0x103   :  { %1816 = vmatprep.subr.bf16.mxu0 %v1815_v24 }
 0x116   :  { %v399_v41 = vpop.f32.mrb[0].mxu1 }
 0x117   :  { %v433_v43 = vmul.f32 0.17677669, %v399_v41  ;;  %v1541_v44 = vpop.f32.mrb[1].mxu1 }
 0x119   :  { %v2292_v45 = vadd.f32 %v433_v43, %v20_v42 }
 0x11a   :  { %v404_v46 = vpop.f32.mrb[2].mxu1 }
 0x11b   :  { %v434_v48 = vmul.f32 0.17677669, %v404_v46  ;;  %447 = vmax.xlane.f32.xlu0 %v2292_v45  ;;  %v1544_v49 = vpop.f32.mrb[3].mxu1 }
 0x11d   :  { %v2298_v50 = vadd.f32 %v434_v48, %v21_v47 }
 0x11e   :  { %v409_v51 = vpop.f32.mrb[4].mxu1 }
 0x11f   :  { %v435_v53 = vmul.f32 0.17677669, %v409_v51  ;;  %449 = vmax.xlane.f32.xlu0 %v2298_v50  ;;  %v1547_v54 = vpop.f32.mrb[5].mxu1 }
 0x121   :  { %v2304_v55 = vadd.f32 %v435_v53, %v22_v52 }
 0x122   :  { %v414_v56 = vpop.f32.mrb[6].mxu1 }
 0x123   :  { %v436_v58 = vmul.f32 0.17677669, %v414_v56  ;;  %451 = vmax.xlane.f32.xlu1 %v2304_v55  ;;  %v1550_v59 = vpop.f32.mrb[7].mxu1 }
 0x125   :  { %v2310_v60 = vadd.f32 %v436_v58, %v23_v57 }
 0x126   :  { %v419_v61 = vpop.f32.mrb[8].mxu1 }
 0x127   :  { %v437_v63 = vmul.f32 0.17677669, %v419_v61  ;;  %453 = vmax.xlane.f32.xlu1 %v2310_v60  ;;  %v1553_v1 = vpop.f32.mrb[9].mxu1 }
 0x129   :  { %v2316_v2 = vadd.f32 %v437_v63, %v24_v62 }
 0x12a   :  { %v424_v6 = vpop.f32.mrb[10].mxu1 }
 0x12b   :  { %v438_v9 = vmul.f32 0.17677669, %v424_v6  ;;  %455 = vmax.xlane.f32.xlu0 %v2316_v2  ;;  %v1556_v10 = vpop.f32.mrb[11].mxu1  ;;  %v1295_v6 = vld [vmem:[%s2563_s3 + $0x30] sm:$0xff] }
 0x12d   :  { %v2322_v12 = vadd.f32 %v438_v9, %v25_v7 }
 0x12e   :  { %v429_v14 = vpop.f32.mrb[12].mxu1 }
 0x12f   :  { %v439_v17 = vmul.f32 0.17677669, %v429_v14  ;;  %457 = vmax.xlane.f32.xlu1 %v2322_v12  ;;  %v1559_v18 = vpop.f32.mrb[13].mxu1 }
 0x131   :  { %v2329_v20 = vadd.f32 %v439_v17, %v26_v15 }
 0x133   :  { %459 = vmax.xlane.f32.xlu0 %v2329_v20 }
 0x156   :  { %v992_v25 = vpop.f32.mrb[14].mxu1 }
 0x157   :  { %v1026_v26 = vmul.f32 0.17677669, %v992_v25  ;;  %v1679_v27 = vpop.f32.mrb[15].mxu1  ;;  %v1280_v25 = vld [vmem:[%s2564_s2 + $0x98] sm:$0xff] }
 0x158   :  { %v1282_v27 = vld [vmem:[%s2564_s2 + $0xa8] sm:$0xff] }
 0x159   :  { %v2339_v28 = vadd.f32 %v1026_v26, %v20_v42  ;;  %v1281_v26 = vld [vmem:[%s2564_s2 + $0xa0] sm:$0xff] }
 0x15a   :  { %v997_v29 = vpop.f32.mrb[16].mxu1 }
 0x15b   :  { %v1027_v30 = vmul.f32 0.17677669, %v997_v29  ;;  %1040 = vmax.xlane.f32.xlu1 %v2339_v28  ;;  %v1682_v31 = vpop.f32.mrb[17].mxu1  ;;  %v1283_v29 = vld [vmem:[%s2564_s2 + $0xb0] sm:$0xff] }
 0x15c   :  { %v1285_v31 = vld [vmem:[%s2564_s2 + $0xc0] sm:$0xff] }
 0x15d   :  { %v2342_v32 = vadd.f32 %v1027_v30, %v21_v47  ;;  %v1284_v30 = vld [vmem:[%s2564_s2 + $0xb8] sm:$0xff] }
 0x15e   :  { %v1002_v33 = vpop.f32.mrb[18].mxu1 }
 0x15f   :  { %v1028_v34 = vmul.f32 0.17677669, %v1002_v33  ;;  %1042 = vmax.xlane.f32.xlu0 %v2342_v32  ;;  %v1685_v35 = vpop.f32.mrb[19].mxu1  ;;  %v1286_v33 = vld [vmem:[%s2564_s2 + $0xc8] sm:$0xff] }
 0x160   :  { %v1288_v35 = vld [vmem:[%s2564_s2 + $0xd8] sm:$0xff] }
 0x161   :  { %v2345_v36 = vadd.f32 %v1028_v34, %v22_v52  ;;  %v1287_v34 = vld [vmem:[%s2564_s2 + $0xd0] sm:$0xff] }
 0x162   :  { %v1007_v37 = vpop.f32.mrb[20].mxu1 }
 0x163   :  { %v1029_v38 = vmul.f32 0.17677669, %v1007_v37  ;;  %1044 = vmax.xlane.f32.xlu1 %v2345_v36  ;;  %v1688_v39 = vpop.f32.mrb[21].mxu1  ;;  %v1289_v37 = vld [vmem:[%s2564_s2 + $0xe0] sm:$0xff] }
 0x164   :  { %v1290_v39 = vld [vmem:[%s2564_s2 + $0xe8] sm:$0xff] }
 0x165   :  { %v2348_v40 = vadd.f32 %v1029_v38, %v23_v57 }
 0x166   :  { %v1012_v41 = vpop.f32.mrb[22].mxu1 }
 0x167   :  { %v1030_v42 = vmul.f32 0.17677669, %v1012_v41  ;;  %1046 = vmax.xlane.f32.xlu0 %v2348_v40  ;;  %v1691_v43 = vpop.f32.mrb[23].mxu1 }
 0x169   :  { %v2351_v44 = vadd.f32 %v1030_v42, %v24_v62  ;;  %v1291_v42 = vld [vmem:[%s2564_s2 + $0xf0] sm:$0xff] }
 0x16a   :  { %v1017_v46 = vpop.f32.mrb[24].mxu1 }
 0x16b   :  { %v1031_v47 = vmul.f32 0.17677669, %v1017_v46  ;;  %1048 = vmax.xlane.f32.xlu1 %v2351_v44  ;;  %v1694_v48 = vpop.f32.mrb[25].mxu1 }
 0x16d   :  { %v2354_v49 = vadd.f32 %v1031_v47, %v25_v7  ;;  %v1296_v7 = vld [vmem:[%s2563_s3 + $0x38] sm:$0xff] }
 0x16e   :  { %v1022_v51 = vpop.f32.mrb[26].mxu1  ;;  %v1819_v9 = vpack.c.bf16 %v1296_v7, %v1295_v6  ;;  %v1292_v47 = vld [vmem:[%s2564_s2 + $0xf8] sm:$0xff] }
 0x16f   :  { %v1032_v52 = vmul.f32 0.17677669, %v1022_v51  ;;  %1050 = vmax.xlane.f32.xlu0 %v2354_v49  ;;  %v1697_v53 = vpop.f32.mrb[27].mxu1 }
 0x171   :  { %v2357_v54 = vadd.f32 %v1032_v52, %v26_v15 }
 0x173   :  { %1052 = vmax.xlane.f32.xlu1 %v2357_v54 }
 0x1a8   :  { %v448_v56 = vpop.xlane.xlu0 %447 }
 0x1a9   :  { %v461_v57 = vsub.f32 %v2292_v45, %v448_v56 }
 0x1ab   :  { %v468_v58 = vmul.f32 1.442695, %v461_v57 }
 0x1ac   :  { %v450_v59 = vpop.xlane.xlu0 %449 }
 0x1ad   :  { %1882 = vpow2.f32 %v468_v58  ;;  %v462_v61 = vsub.f32 %v2298_v50, %v450_v59 }
 0x1af   :  { %v470_v62 = vmul.f32 1.442695, %v462_v61 }
 0x1b0   :  { %v452_v63 = vpop.xlane.xlu1 %451 }
 0x1b1   :  { %1884 = vpow2.f32 %v470_v62  ;;  %v463_v1 = vsub.f32 %v2304_v55, %v452_v63 }
 0x1b3   :  { %v472_v5 = vmul.f32 1.442695, %v463_v1 }
 0x1b4   :  { %v454_v45 = vpop.xlane.xlu1 %453 }
 0x1b5   :  { %1886 = vpow2.f32 %v472_v5  ;;  %v464_v8 = vsub.f32 %v2310_v60, %v454_v45 }
 0x1b7   :  { %v1883_v50 = vpop.eup %1882  ;;  %v474_v10 = vmul.f32 1.442695, %v464_v8 }
 0x1b8   :  { %1593 = vmatmul.mubr.f32.vlgmr.msra.gmra.mrb[16].mxu0 %v1883_v50  ;;  %v456_v11 = vpop.xlane.xlu0 %455  ;;  %482 = vadd.xlane.f32.xlu0 %v1883_v50 }
 0x1b9   :  { %1888 = vpow2.f32 %v474_v10  ;;  %v465_v55 = vsub.f32 %v2316_v2, %v456_v11  ;;  %1818 = vmatpush3.bf16.msra.mxu0 %v1815_v24  ;;  %1595 = vmatprep.mubr.msk.f32.mxu0 %vm1939_vm2, %v1940_v4  ;;  %v1279_v24 = vld [vmem:[%s2564_s2 + $0x90] sm:$0xff] }
 0x1ba   :  { %1820 = vmatprep.subr.bf16.mxu0 %v1819_v9 }
 0x1bb   :  { %v1885_v13 = vpop.eup %1884  ;;  %v476_v14 = vmul.f32 1.442695, %v465_v55 }
 0x1bc   :  { %1596 = vmatmul.mubr.f32.gmra.mrb[18].mxu0 %v1885_v13  ;;  %v458_v15 = vpop.xlane.xlu1 %457  ;;  %484 = vadd.xlane.f32.xlu1 %v1885_v13 }
 0x1bd   :  { %1890 = vpow2.f32 %v476_v14  ;;  %v466_v60 = vsub.f32 %v2322_v12, %v458_v15  ;;  %1598 = vmatprep.mubr.msk.f32.mxu0 %vm1939_vm2, %v1940_v4  ;;  %1822 = vmatpush3.bf16.msra.mxu0 %v1819_v9 }
 0x1be   :  { %1855 = vmatprep.subr.bf16.mxu0 %v1938_v0 }
 0x1bf   :  { %v1887_v2 = vpop.eup %1886  ;;  %v478_v16 = vmul.f32 1.442695, %v466_v60 }
 0x1c0   :  { %1599 = vmatmul.mubr.f32.gmra.mrb[20].mxu0 %v1887_v2  ;;  %v460_v17 = vpop.xlane.xlu0 %459  ;;  %486 = vadd.xlane.f32.xlu0 %v1887_v2 }
 0x1c1   :  { %1892 = vpow2.f32 %v478_v16  ;;  %v467_v18 = vsub.f32 %v2329_v20, %v460_v17  ;;  %1601 = vmatprep.mubr.msk.f32.mxu0 %vm1939_vm2, %v1940_v4  ;;  %v1277_v20 = vld [vmem:[%s2564_s2 + $0x80] sm:$0xff] }
 0x1c3   :  { %v1889_v19 = vpop.eup %1888  ;;  %v480_v3 = vmul.f32 1.442695, %v467_v18 }
 0x1c4   :  { %1602 = vmatmul.mubr.f32.gmra.mrb[22].mxu0 %v1889_v19  ;;  %488 = vadd.xlane.f32.xlu1 %v1889_v19 }
 0x1c5   :  { %1894 = vpow2.f32 %v480_v3  ;;  %1604 = vmatprep.mubr.msk.f32.mxu0 %vm1939_vm2, %v1940_v4 }
 0x1c7   :  { %v1891_v12 = vpop.eup %1890 }
 0x1c8   :  { %1605 = vmatmul.mubr.f32.gmra.mrb[24].mxu0 %v1891_v12  ;;  %490 = vadd.xlane.f32.xlu0 %v1891_v12 }
 0x1c9   :  { %1607 = vmatprep.mubr.msk.f32.mxu0 %vm1939_vm2, %v1940_v4 }
 0x1cb   :  { %v1893_v21 = vpop.eup %1892 }
 0x1cc   :  { %1608 = vmatmul.mubr.f32.gmra.mrb[26].mxu0 %v1893_v21  ;;  %492 = vadd.xlane.f32.xlu1 %v1893_v21 }
 0x1cd   :  { %1610 = vmatprep.mubr.msk.f32.mxu0 %vm1939_vm2, %v1940_v4 }
 0x1cf   :  { %v1895_v22 = vpop.eup %1894 }
 0x1d0   :  { %1611 = vmatmul.mubr.f32.gmra.mrb[28].mxu0 %v1895_v22  ;;  %494 = vadd.xlane.f32.xlu0 %v1895_v22 }
 0x1d1   :  { %1621 = vmatprep.mubr.msk.f32.mxu0 %vm70_vm0, %v1277_v20 }
 0x1d4   :  { %1622 = vmatmul.mubr.msk.f32.vlgmr.msra.gmra.mrb[30].mxu0 %vm70_vm0, %v1278_v23 }
 0x1d5   :  { %1624 = vmatprep.mubr.msk.f32.mxu0 %vm70_vm0, %v1279_v24 }
 0x1d8   :  { %1625 = vmatmul.mubr.msk.f32.gmra.mrb[32].mxu0 %vm70_vm0, %v1280_v25 }
 0x1d9   :  { %1627 = vmatprep.mubr.msk.f32.mxu0 %vm70_vm0, %v1281_v26 }
 0x1dc   :  { %1628 = vmatmul.mubr.msk.f32.gmra.mrb[34].mxu0 %vm70_vm0, %v1282_v27 }
 0x1dd   :  { %1630 = vmatprep.mubr.msk.f32.mxu0 %vm70_vm0, %v1283_v29 }
 0x1e0   :  { %1631 = vmatmul.mubr.msk.f32.gmra.mrb[36].mxu0 %vm70_vm0, %v1284_v30 }
 0x1e1   :  { %1633 = vmatprep.mubr.msk.f32.mxu0 %vm70_vm0, %v1285_v31 }
 0x1e4   :  { %1634 = vmatmul.mubr.msk.f32.gmra.mrb[38].mxu0 %vm70_vm0, %v1286_v33 }
 0x1e5   :  { %1636 = vmatprep.mubr.msk.f32.mxu0 %vm70_vm0, %v1287_v34 }
 0x1e8   :  { %1637 = vmatmul.mubr.msk.f32.gmra.mrb[40].mxu0 %vm70_vm0, %v1288_v35  ;;  %v1041_v38 = vpop.xlane.xlu1 %1040 }
 0x1e9   :  { %1639 = vmatprep.mubr.msk.f32.mxu0 %vm70_vm0, %v1289_v37  ;;  %v1054_v41 = vsub.f32 %v2339_v28, %v1041_v38 }
 0x1eb   :  { %v1061_v43 = vmul.f32 1.442695, %v1054_v41 }
 0x1ec   :  { %1640 = vmatmul.mubr.msk.f32.gmra.mrb[42].mxu0 %vm70_vm0, %v1290_v39  ;;  %v1043_v46 = vpop.xlane.xlu0 %1042 }
 0x1ed   :  { %1642 = vmatprep.mubr.msk.f32.mxu0 %vm70_vm0, %v1291_v42  ;;  %1896 = vpow2.f32 %v1061_v43  ;;  %v1055_v48 = vsub.f32 %v2342_v32, %v1043_v46 }
 0x1ef   :  { %v1063_v51 = vmul.f32 1.442695, %v1055_v48 }
 0x1f0   :  { %1643 = vmatmul.mubr.msk.f32.gmra.mrb[44].mxu0 %vm70_vm0, %v1292_v47  ;;  %v1045_v28 = vpop.xlane.xlu1 %1044 }
 0x1f1   :  { %1898 = vpow2.f32 %v1063_v51  ;;  %v1056_v52 = vsub.f32 %v2345_v36, %v1045_v28  ;;  %1730 = vmatprep.mubr.msk.f32.mxu0 %vm1939_vm2, %v1940_v4 }
 0x1f3   :  { %v1065_v53 = vmul.f32 1.442695, %v1056_v52 }
 0x1f4   :  { %v1047_v56 = vpop.xlane.xlu0 %1046 }
 0x1f5   :  { %1900 = vpow2.f32 %v1065_v53  ;;  %v1057_v57 = vsub.f32 %v2348_v40, %v1047_v56 }
 0x1f7   :  { %v2456_v58 = vpop.eup %1896  ;;  %v1067_v59 = vmul.f32 1.442695, %v1057_v57 }
 0x1f8   :  { %v1049_v61 = vpop.xlane.xlu1 %1048  ;;  %1075 = vadd.xlane.f32.xlu1 %v2456_v58 }
 0x1f9   :  { %1902 = vpow2.f32 %v1067_v59  ;;  %v1058_v32 = vsub.f32 %v2351_v44, %v1049_v61 }
 0x1fb   :  { %v2460_v62 = vpop.eup %1898  ;;  %v1069_v36 = vmul.f32 1.442695, %v1058_v32 }
 0x1fc   :  { %1077 = vadd.xlane.f32.xlu0 %v2460_v62  ;;  %v1051_v63 = vpop.xlane.xlu0 %1050 }
 0x1fd   :  { %1904 = vpow2.f32 %v1069_v36  ;;  %v1059_v1 = vsub.f32 %v2354_v49, %v1051_v63 }
 0x1ff   :  { %v2464_v5 = vpop.eup %1900  ;;  %v1071_v40 = vmul.f32 1.442695, %v1059_v1 }
 0x200   :  { %1079 = vadd.xlane.f32.xlu1 %v2464_v5  ;;  %v1053_v6 = vpop.xlane.xlu1 %1052 }
 0x201   :  { %1906 = vpow2.f32 %v1071_v40  ;;  %v1060_v7 = vsub.f32 %v2357_v54, %v1053_v6 }
 0x203   :  { %v2468_v45 = vpop.eup %1902  ;;  %v1073_v44 = vmul.f32 1.442695, %v1060_v7 }
 0x204   :  { %1081 = vadd.xlane.f32.xlu0 %v2468_v45 }
 0x205   :  { %1908 = vpow2.f32 %v1073_v44 }
 0x207   :  { %v2471_v8 = vpop.eup %1904 }
 0x208   :  { %1083 = vadd.xlane.f32.xlu1 %v2471_v8 }
 0x20b   :  { %v2474_v49 = vpop.eup %1906 }
 0x20c   :  { %1085 = vadd.xlane.f32.xlu0 %v2474_v49 }
 0x20f   :  { %v2477_v9 = vpop.eup %1908 }
 0x210   :  { %1087 = vadd.xlane.f32.xlu1 %v2477_v9 }
 0x245   :  { %v483_v50 = vpop.xlane.xlu0 %482 }
 0x246   :  { %1910 = vrcp.f32 %v483_v50 }
 0x249   :  { %v485_v54 = vpop.xlane.xlu1 %484 }
 0x24a   :  { %1912 = vrcp.f32 %v485_v54 }
 0x24d   :  { %v487_v10 = vpop.xlane.xlu0 %486 }
 0x24e   :  { %1914 = vrcp.f32 %v487_v10 }
 0x250   :  { %v1911_v55 = vpop.eup %1910 }
 0x251   :  { %v489_v11 = vpop.xlane.xlu1 %488 }
 0x252   :  { %1916 = vrcp.f32 %v489_v11 }
 0x254   :  { %v1913_v2 = vpop.eup %1912 }
 0x255   :  { %v491_v60 = vpop.xlane.xlu0 %490 }
 0x256   :  { %1918 = vrcp.f32 %v491_v60 }
 0x258   :  { %v1915_v3 = vpop.eup %1914 }
 0x259   :  { %v493_v19 = vpop.xlane.xlu1 %492 }
 0x25a   :  { %1920 = vrcp.f32 %v493_v19 }
 0x25c   :  { %v1917_v23 = vpop.eup %1916 }
 0x25d   :  { %v495_v22 = vpop.xlane.xlu0 %494 }
 0x25e   :  { %1922 = vrcp.f32 %v495_v22 }
 0x260   :  { %v1919_v27 = vpop.eup %1918 }
 0x264   :  { %v1921_v33 = vpop.eup %1920 }
 0x268   :  { %v1923_v38 = vpop.eup %1922 }
 0x28b   :  { %v562_v13 = vpop.f32.mrb[16].mxu0 }
 0x28c   :  { %v597_v14 = vmul.f32 %v1911_v55, %v562_v13  ;;  %v1594_v15 = vpop.f32.mrb[17].mxu0 }
 0x28e   :  { %610 = vst.msk [vmem:[%s2567_s5] sm:$0xff] %vm70_vm0, %v597_v14 }
 0x28f   :  { %v567_v16 = vpop.f32.mrb[18].mxu0 }
 0x290   :  { %v599_v17 = vmul.f32 %v1913_v2, %v567_v16  ;;  %v1597_v18 = vpop.f32.mrb[19].mxu0 }
 0x292   :  { %611 = vst.msk [vmem:[%s2567_s5 + $0x8] sm:$0xff] %vm70_vm0, %v599_v17 }
 0x293   :  { %v572_v12 = vpop.f32.mrb[20].mxu0 }
 0x294   :  { %v601_v21 = vmul.f32 %v1915_v3, %v572_v12  ;;  %v1600_v20 = vpop.f32.mrb[21].mxu0 }
 0x296   :  { %612 = vst.msk [vmem:[%s2567_s5 + $0x10] sm:$0xff] %vm70_vm0, %v601_v21 }
 0x297   :  { %v577_v24 = vpop.f32.mrb[22].mxu0 }
 0x298   :  { %v603_v25 = vmul.f32 %v1917_v23, %v577_v24  ;;  %v1603_v26 = vpop.f32.mrb[23].mxu0 }
 0x29a   :  { %613 = vst.msk [vmem:[%s2567_s5 + $0x18] sm:$0xff] %vm70_vm0, %v603_v25 }
 0x29b   :  { %v582_v29 = vpop.f32.mrb[24].mxu0 }
 0x29c   :  { %v605_v30 = vmul.f32 %v1919_v27, %v582_v29  ;;  %v1606_v31 = vpop.f32.mrb[25].mxu0 }
 0x29e   :  { %614 = vst.msk [vmem:[%s2567_s5 + $0x20] sm:$0xff] %vm70_vm0, %v605_v30 }
 0x29f   :  { %v587_v34 = vpop.f32.mrb[26].mxu0 }
 0x2a0   :  { %v607_v35 = vmul.f32 %v1921_v33, %v587_v34  ;;  %v1609_v37 = vpop.f32.mrb[27].mxu0 }
 0x2a2   :  { %615 = vst.msk [vmem:[%s2567_s5 + $0x28] sm:$0xff] %vm70_vm0, %v607_v35 }
 0x2a3   :  { %v592_v39 = vpop.f32.mrb[28].mxu0 }
 0x2a4   :  { %v609_v41 = vmul.f32 %v1923_v38, %v592_v39  ;;  %v1612_v42 = vpop.f32.mrb[29].mxu0 }
 0x2a6   :  { %616 = vst.msk [vmem:[%s2567_s5 + $0x30] sm:$0xff] %vm70_vm0, %v609_v41 }
 0x2a7   :  { %v1623_v43 = vpop.f32.mrb[30].mxu0 }
 0x2a8   :  { %v778_v46 = vpop.f32.mrb[31].mxu0 }
 0x2a9   :  { %v1856_v47 = vpack.c.bf16 %v1623_v43, %v778_v46 }
 0x2ab   :  { %v1626_v48 = vpop.f32.mrb[32].mxu0  ;;  %1857 = vmatpush3.bf16.msra.mxu0 %v1856_v47 }
 0x2ac   :  { %v788_v51 = vpop.f32.mrb[33].mxu0  ;;  %1858 = vmatprep.subr.bf16.mxu0 %v1938_v0 }
 0x2ad   :  { %v1859_v28 = vpack.c.bf16 %v1626_v48, %v788_v51 }
 0x2af   :  { %v1629_v52 = vpop.f32.mrb[34].mxu0  ;;  %1860 = vmatpush3.bf16.msra.mxu0 %v1859_v28 }
 0x2b0   :  { %v798_v53 = vpop.f32.mrb[35].mxu0  ;;  %1861 = vmatprep.subr.bf16.mxu0 %v1938_v0 }
 0x2b1   :  { %v1862_v56 = vpack.c.bf16 %v1629_v52, %v798_v53 }
 0x2b3   :  { %v1632_v57 = vpop.f32.mrb[36].mxu0  ;;  %1863 = vmatpush3.bf16.msra.mxu0 %v1862_v56 }
 0x2b4   :  { %v808_v59 = vpop.f32.mrb[37].mxu0  ;;  %1864 = vmatprep.subr.bf16.mxu0 %v1938_v0 }
 0x2b5   :  { %v1865_v61 = vpack.c.bf16 %v1632_v57, %v808_v59 }
 0x2b7   :  { %v1635_v32 = vpop.f32.mrb[38].mxu0  ;;  %1866 = vmatpush3.bf16.msra.mxu0 %v1865_v61 }
 0x2b8   :  { %v818_v36 = vpop.f32.mrb[39].mxu0  ;;  %1867 = vmatprep.subr.bf16.mxu0 %v1938_v0 }
 0x2b9   :  { %v1868_v63 = vpack.c.bf16 %v1635_v32, %v818_v36 }
 0x2bb   :  { %v1638_v1 = vpop.f32.mrb[40].mxu0  ;;  %1869 = vmatpush3.bf16.msra.mxu0 %v1868_v63 }
 0x2bc   :  { %v828_v40 = vpop.f32.mrb[41].mxu0  ;;  %1870 = vmatprep.subr.bf16.mxu0 %v1938_v0 }
 0x2bd   :  { %v1871_v6 = vpack.c.bf16 %v1638_v1, %v828_v40 }
 0x2bf   :  { %v1641_v7 = vpop.f32.mrb[42].mxu0  ;;  %1872 = vmatpush3.bf16.msra.mxu0 %v1871_v6 }
 0x2c0   :  { %v838_v44 = vpop.f32.mrb[43].mxu0  ;;  %1873 = vmatprep.subr.bf16.mxu0 %v1938_v0 }
 0x2c1   :  { %v1874_v50 = vpack.c.bf16 %v1641_v7, %v838_v44 }
 0x2c3   :  { %v1644_v54 = vpop.f32.mrb[44].mxu0  ;;  %1875 = vmatpush3.bf16.msra.mxu0 %v1874_v50 }
 0x2c4   :  { %v848_v10 = vpop.f32.mrb[45].mxu0  ;;  %1876 = vmatprep.subr.bf16.mxu0 %v1938_v0  ;;  %v1076_v0 = vpop.xlane.xlu1 %1075 }
 0x2c5   :  { %v1877_v11 = vpack.c.bf16 %v1644_v54, %v848_v10  ;;  %1924 = vrcp.f32 %v1076_v0 }
 0x2c7   :  { %1878 = vmatpush3.bf16.msra.mxu0 %v1877_v11 }
 0x2ca   :  { %1731 = vmatmul.mubr.f32.vlgmr.msra.gmra.mrb[46].mxu0 %v2456_v58  ;;  %v1078_v58 = vpop.xlane.xlu0 %1077 }
 0x2cb   :  { %1733 = vmatprep.mubr.msk.f32.mxu0 %vm1939_vm2, %v1940_v4  ;;  %1926 = vrcp.f32 %v1078_v58 }
 0x2ce   :  { %1734 = vmatmul.mubr.f32.gmra.mrb[48].mxu0 %v2460_v62  ;;  %v1080_v62 = vpop.xlane.xlu1 %1079 }
 0x2cf   :  { %1736 = vmatprep.mubr.msk.f32.mxu0 %vm1939_vm2, %v1940_v4  ;;  %1928 = vrcp.f32 %v1080_v62 }
 0x2d2   :  { %1737 = vmatmul.mubr.f32.gmra.mrb[50].mxu0 %v2464_v5  ;;  %v1082_v5 = vpop.xlane.xlu0 %1081  ;;  %v1084_v14 = vpop.xlane.xlu1 %1083 }
 0x2d3   :  { %1739 = vmatprep.mubr.msk.f32.mxu0 %vm1939_vm2, %v1940_v4  ;;  %1930 = vrcp.f32 %v1082_v5 }
 0x2d4   :  { %1932 = vrcp.f32 %v1084_v14 }
 0x2d6   :  { %1740 = vmatmul.mubr.f32.gmra.mrb[52].mxu0 %v2468_v45  ;;  %v1925_v45 = vpop.eup %1924  ;;  %v1086_v60 = vpop.xlane.xlu0 %1085 }
 0x2d7   :  { %1742 = vmatprep.mubr.msk.f32.mxu0 %vm1939_vm2, %v1940_v4  ;;  %1934 = vrcp.f32 %v1086_v60  ;;  %v1088_v19 = vpop.xlane.xlu1 %1087 }
 0x2d8   :  { %1936 = vrcp.f32 %v1088_v19 }
 0x2da   :  { %1743 = vmatmul.mubr.f32.gmra.mrb[54].mxu0 %v2471_v8 }
 0x2db   :  { %1745 = vmatprep.mubr.msk.f32.mxu0 %vm1939_vm2, %v1940_v4 }
 0x2de   :  { %1746 = vmatmul.mubr.f32.gmra.mrb[56].mxu0 %v2474_v49 }
 0x2df   :  { %1748 = vmatprep.mubr.msk.f32.mxu0 %vm1939_vm2, %v1940_v4  ;;  %v1927_v4 = vpop.eup %1926 }
 0x2e0   :  { %v1929_v2 = vpop.eup %1928 }
 0x2e1   :  { %v1931_v3 = vpop.eup %1930 }
 0x2e2   :  { %1749 = vmatmul.mubr.f32.gmra.mrb[58].mxu0 %v2477_v9  ;;  %v1933_v22 = vpop.eup %1932 }
 0x2e3   :  { %v1935_v26 = vpop.eup %1934 }
 0x2e4   :  { %v1937_v31 = vpop.eup %1936 }
 0x39d   :  { %v1155_v55 = vpop.f32.mrb[46].mxu0 }
 0x39e   :  { %v1190_v8 = vmul.f32 %v1925_v45, %v1155_v55  ;;  %v1732_v13 = vpop.f32.mrb[47].mxu0 }
 0x3a0   :  { %1336 = vst.msk [vmem:[%s2567_s5 + $0x38] sm:$0xff] %vm70_vm0, %v1190_v8 }
 0x3a1   :  { %v1160_v49 = vpop.f32.mrb[48].mxu0 }
 0x3a2   :  { %v1192_v9 = vmul.f32 %v1927_v4, %v1160_v49  ;;  %v1735_v15 = vpop.f32.mrb[49].mxu0 }
 0x3a4   :  { %1337 = vst.msk [vmem:[%s2567_s5 + $0x40] sm:$0xff] %vm70_vm0, %v1192_v9 }
 0x3a5   :  { %v1165_v16 = vpop.f32.mrb[50].mxu0 }
 0x3a6   :  { %v1194_v17 = vmul.f32 %v1929_v2, %v1165_v16  ;;  %v1738_v18 = vpop.f32.mrb[51].mxu0 }
 0x3a8   :  { %1338 = vst.msk [vmem:[%s2567_s5 + $0x48] sm:$0xff] %vm70_vm0, %v1194_v17 }
 0x3a9   :  { %v1170_v12 = vpop.f32.mrb[52].mxu0 }
 0x3aa   :  { %v1196_v21 = vmul.f32 %v1931_v3, %v1170_v12  ;;  %v1741_v20 = vpop.f32.mrb[53].mxu0 }
 0x3ac   :  { %1339 = vst.msk [vmem:[%s2567_s5 + $0x50] sm:$0xff] %vm70_vm0, %v1196_v21 }
 0x3ad   :  { %v1175_v23 = vpop.f32.mrb[54].mxu0 }
 0x3ae   :  { %v1198_v24 = vmul.f32 %v1933_v22, %v1175_v23  ;;  %v1744_v25 = vpop.f32.mrb[55].mxu0 }
 0x3b0   :  { %1340 = vst.msk [vmem:[%s2567_s5 + $0x58] sm:$0xff] %vm70_vm0, %v1198_v24 }
 0x3b1   :  { %v1180_v27 = vpop.f32.mrb[56].mxu0 }
 0x3b2   :  { %v1200_v29 = vmul.f32 %v1935_v26, %v1180_v27  ;;  %v1747_v30 = vpop.f32.mrb[57].mxu0 }
 0x3b4   :  { %1341 = vst.msk [vmem:[%s2567_s5 + $0x60] sm:$0xff] %vm70_vm0, %v1200_v29 }
 0x3b5   :  { %v1185_v33 = vpop.f32.mrb[58].mxu0 }
 0x3b6   :  { %v1202_v34 = vmul.f32 %v1937_v31, %v1185_v33  ;;  %v1750_v35 = vpop.f32.mrb[59].mxu0 }
 0x3b8   :  { %1342 = vst.msk [vmem:[%s2567_s5 + $0x68] sm:$0xff] %vm70_vm0, %v1202_v34 }

</bundles_post_ra>
